<compile_context>
chip_gen: v7x
topology: tpu7x:2x2x1
jax: 0.10.0
libtpu: 0.0.40
codegen_flags: <defaults>
</compile_context>

<pallas_src>
import functools

import jax
import jax.numpy as jnp
from jax.experimental import pallas as pl
from jax.experimental.pallas import tpu as pltpu

_LANE = 128                 # TPU lane width (last-dim tiling unit)
_SUBLANE_32 = 8             # sublane tiling unit for 32-bit dtypes
_CLIP_EPS = 0.001           # BCE clip in the reference module
_TARGET_BLOCK_ROWS = 8192   # 8192 x 128 x 4B = 4 MiB per f32 input block


def _round_up(x, m):
    return ((x + m - 1) // m) * m


def _sublane_unit(*dtypes):
    """Sublane packing unit: 8 for 32-bit, 16 for 16-bit, 32 for 8-bit."""
    min_itemsize = min(jnp.dtype(d).itemsize for d in dtypes)
    return _SUBLANE_32 * max(1, 4 // max(1, min_itemsize))


def _elementwise_loss(pred_f32, gt_f32, loss_type):
    """Per-element loss (reduction='none'), computed in f32."""
    if loss_type == "MSE":
        d = pred_f32 - gt_f32
        return d * d
    elif loss_type == "L1":
        return jnp.abs(pred_f32 - gt_f32)
    elif loss_type == "BCE":
        # Reference clips the *prediction* before BCELoss.  Two-log form keeps
        # soft (non-binary) ground-truth masks exact.
        p = jnp.clip(pred_f32, _CLIP_EPS, 1.0 - _CLIP_EPS)
        return -(gt_f32 * jnp.log(p) + (1.0 - gt_f32) * jnp.log(1.0 - p))
    else:
        raise NotImplementedError(f"Loss type {loss_type} not supported")


# ---------------------------------------------------------------------------
# do_mean=True kernel: grid (P partials, K tiles [reduction]).
# Each step tree-reduces its (block_rows, 128) loss block to one (1, 128) row
# and adds it into a single-vreg accumulator; the wrapper sums the (P, 1, 128)
# partials and divides by the true element count.
# ---------------------------------------------------------------------------
def _mask_loss_mean_kernel(pred_ref, gt_ref, out_ref, acc_ref, *, loss_type):
    k = pl.program_id(1)

    @pl.when(k == 0)
    def _():
        acc_ref[...] = jnp.zeros_like(acc_ref)

    pred = pred_ref[...].astype(jnp.float32)
    gt = gt_ref[...].astype(jnp.float32)
    loss = _elementwise_loss(pred, gt, loss_type)

    # Tree of VALU vreg+vreg adds collapses the block; the final cross-sublane
    # step rides the otherwise-idle XLU.  Accumulator stays one vreg.
    acc_ref[...] += jnp.sum(loss, axis=0, keepdims=True)

    @pl.when(k == pl.num_programs(1) - 1)
    def _():
        out_ref[0] = acc_ref[...]


# ---------------------------------------------------------------------------
# do_mean=False kernel: element-wise loss map on the lane-dense layout.
# ---------------------------------------------------------------------------
def _mask_loss_elem_kernel(pred_ref, gt_ref, out_ref, *, loss_type):
    pred = pred_ref[...].astype(jnp.float32)
    gt = gt_ref[...].astype(jnp.float32)
    out_ref[...] = _elementwise_loss(pred, gt, loss_type).astype(out_ref.dtype)


def _to_lane_dense(x, covered_rows):
    """Flatten to (covered_rows, 128), zero-padding the tail if needed.

    No copy when x.size == covered_rows*128 (common power-of-two N_rays case);
    ragged shapes pay one tail-pad copy, which stays numerically neutral
    (zeros) for MSE/L1 and is constant-corrected for BCE in the wrapper.
    """
    total = x.size
    flat = x.reshape(-1)
    covered = covered_rows * _LANE
    if covered != total:
        flat = jnp.pad(flat, (0, covered - total))
    return flat.reshape(covered_rows, _LANE)


def mask_loss(output_mask, gt_mask, *, loss_type="MSE", do_mean=True,
              target_block_rows=_TARGET_BLOCK_ROWS, use_core_parallel=False):
    """Pallas implementation of MaskLoss.forward for a single key.

    Args:
      output_mask: (B, N_rays) predicted mask.
      gt_mask:     (B, N_rays) ground-truth mask.
      use_core_parallel: shard the leading grid axis across TensorCores with
        pltpu.CORE_PARALLEL (useful on v7x; no-op benefit on v5e/v6e).
    Returns:
      scalar mean loss if do_mean, else (B, N_rays) per-element loss.
    """
    assert output_mask.shape == gt_mask.shape
    B, N = output_mask.shape
    total = B * N

    # Non-float masks (bool / int) get cast once up front; math is f32 inside.
    if not jnp.issubdtype(output_mask.dtype, jnp.floating):
        output_mask = output_mask.astype(jnp.float32)
    if not jnp.issubdtype(gt_mask.dtype, jnp.floating):
        gt_mask = gt_mask.astype(jnp.float32)

    sub = _sublane_unit(output_mask.dtype, gt_mask.dtype)

    # Layout plan: rows of 128 lanes, block_rows a multiple of the dtype
    # sublane unit, sized so the per-input block is ~4 MiB with minimal tail.
    rows = pl.cdiv(total, _LANE)
    n_est = max(1, pl.cdiv(rows, target_block_rows))
    block_rows = _round_up(pl.cdiv(rows, n_est), sub)
    n_tiles = pl.cdiv(rows, block_rows)
    covered_rows = n_tiles * block_rows
    pad_count = covered_rows * _LANE - total

    pred2d = _to_lane_dense(output_mask, covered_rows)
    gt2d = _to_lane_dense(gt_mask, covered_rows)

    block_bytes = block_rows * _LANE * 4  # f32 upper bound per buffered block
    leading_sem = pltpu.CORE_PARALLEL if use_core_parallel else "parallel"

    if do_mean:
        # Split the reduction into P independent partial sums (leading axis);
        # with use_core_parallel=True on v7x each TensorCore takes half the
        # tiles.  Serial (harmless) elsewhere.
        num_partials = 2 if (n_tiles >= 2 and n_tiles % 2 == 0) else 1
        tiles_per_partial = n_tiles // num_partials

        kernel = functools.partial(_mask_loss_mean_kernel, loss_type=loss_type)
        in_map = lambda p, k: (p * tiles_per_partial + k, 0)
        partials = pl.pallas_call(
            kernel,
            out_shape=jax.ShapeDtypeStruct((num_partials, 1, _LANE),
                                           jnp.float32),
            grid_spec=pltpu.PrefetchScalarGridSpec(
                num_scalar_prefetch=0,
                grid=(num_partials, tiles_per_partial),
                in_specs=[
                    pl.BlockSpec((block_rows, _LANE), in_map),
                    pl.BlockSpec((block_rows, _LANE), in_map),
                ],
                out_specs=pl.BlockSpec((1, 1, _LANE), lambda p, k: (p, 0, 0)),
                scratch_shapes=[pltpu.VMEM((1, _LANE), jnp.float32)],
            ),
            compiler_params=pltpu.CompilerParams(
                dimension_semantics=(leading_sem, "arbitrary"),
                # 2 inputs x 2 buffers x block, plus slack; explicit so 4 MiB
                # blocks don't trip v5e's 16 MiB scoped default.
                vmem_limit_bytes=int(2 * 2 * block_bytes + (8 << 20))),
        )(pred2d, gt2d)

        loss_sum = jnp.sum(partials)
        if loss_type == "BCE" and pad_count > 0:
            # Padded elements are pred == gt == 0 -> constant clipped BCE loss
            # of -log(1 - eps) each; remove the bias with one scalar op instead
            # of masking every tile in-kernel.
            loss_sum = loss_sum - jnp.float32(pad_count) * (
                -jnp.log(jnp.float32(1.0 - _CLIP_EPS)))
        return loss_sum / jnp.float32(total)
    else:
        kernel = functools.partial(_mask_loss_elem_kernel, loss_type=loss_type)
        out2d = pl.pallas_call(
            kernel,
            out_shape=jax.ShapeDtypeStruct((covered_rows, _LANE),
                                           output_mask.dtype),
            grid_spec=pltpu.PrefetchScalarGridSpec(
                num_scalar_prefetch=0,
                grid=(n_tiles,),
                in_specs=[
                    pl.BlockSpec((block_rows, _LANE), lambda i: (i, 0)),
                    pl.BlockSpec((block_rows, _LANE), lambda i: (i, 0)),
                ],
                out_specs=pl.BlockSpec((block_rows, _LANE), lambda i: (i, 0)),
            ),
            compiler_params=pltpu.CompilerParams(
                dimension_semantics=(leading_sem,),
                # 3 streams (2 in + 1 out) x 2 buffers x block, plus slack.
                vmem_limit_bytes=int(3 * 2 * block_bytes + (8 << 20))),
        )(pred2d, gt2d)
        return out2d.reshape(-1)[:total].reshape(B, N)


class MaskLossPallas:
    """Mirror of the PyTorch MaskLoss module (forward only)."""

    def __init__(self, keys=("mask",), loss_type="MSE", do_mean=True):
        self.keys = list(keys)
        self.loss_type = loss_type
        self.do_mean = do_mean
        # MaskLoss has no learnable parameters; nothing to initialize.

    def __call__(self, data, output):
        gt = data["mask"]
        loss = 0.0
        # NOTE: faithful to the reference — the loop overwrites `loss`,
        # so only the last key's loss is returned.
        for k in self.keys:
            loss = mask_loss(output[k], gt,
                             loss_type=self.loss_type, do_mean=self.do_mean)
        return loss


if __name__ == "__main__":
    key = jax.random.PRNGKey(0)
    k1, k2, k3, k4, k5, k6 = jax.random.split(key, 6)

    # Nicely-shaped case (no padding): (B, N_rays) = (2, 512).
    B, N = 2, 512
    pred = jax.random.uniform(k1, (B, N), dtype=jnp.float32)
    gt = (jax.random.uniform(k2, (B, N), dtype=jnp.float32) > 0.5
          ).astype(jnp.float32)

    loss_fn = MaskLossPallas(keys=["mask"], loss_type="MSE", do_mean=True)
    loss = jax.block_until_ready(loss_fn({"mask": gt}, {"mask": pred}))
    ref = jnp.mean((pred - gt) ** 2)
    assert jnp.allclose(loss, ref, atol=1e-6, rtol=1e-5), (loss, ref)

    # do_mean=False path (L1).
    lmap = jax.block_until_ready(
        mask_loss(pred, gt, loss_type="L1", do_mean=False))
    assert lmap.shape == (B, N)
    assert jnp.allclose(lmap, jnp.abs(pred - gt), atol=1e-6, rtol=1e-5)

    # Multi-tile mean path (exercises partial split + reduction grid) by
    # forcing tiny blocks: (2, 4096) with 8-row blocks -> grid (2, 4).
    Bm, Nm = 2, 4096
    predm = jax.random.uniform(k5, (Bm, Nm), dtype=jnp.float32)
    gtm = (jax.random.uniform(k6, (Bm, Nm), dtype=jnp.float32) > 0.5
           ).astype(jnp.float32)
    mse_m = jax.block_until_ready(
        mask_loss(predm, gtm, loss_type="MSE", do_mean=True,
                  target_block_rows=8))
    assert jnp.allclose(mse_m, jnp.mean((predm - gtm) ** 2),
                        atol=1e-6, rtol=1e-5), mse_m

    # Multi-tile elementwise path with tiny blocks.
    l1_m = jax.block_until_ready(
        mask_loss(predm, gtm, loss_type="L1", do_mean=False,
                  target_block_rows=8))
    assert jnp.allclose(l1_m, jnp.abs(predm - gtm), atol=1e-6, rtol=1e-5)

    # bf16 inputs (exercises dtype-aware sublane rounding + zero-pad path).
    predb = pred.astype(jnp.bfloat16)
    gtb = gt.astype(jnp.bfloat16)
    mse_b = jax.block_until_ready(
        mask_loss(predb, gtb, loss_type="MSE", do_mean=True))
    ref_b = jnp.mean((predb.astype(jnp.float32) - gtb.astype(jnp.float32))**2)
    assert jnp.allclose(mse_b, ref_b, atol=1e-5, rtol=1e-5), (mse_b, ref_b)

    # Ragged case (exercises tail padding + BCE constant correction).
    Br, Nr = 2, 200
    predr = jax.random.uniform(k3, (Br, Nr), dtype=jnp.float32,
                               minval=0.05, maxval=0.95)
    gtr = (jax.random.uniform(k4, (Br, Nr), dtype=jnp.float32) > 0.5
           ).astype(jnp.float32)

    mse_r = jax.block_until_ready(
        mask_loss(predr, gtr, loss_type="MSE", do_mean=True))
    assert jnp.allclose(mse_r, jnp.mean((predr - gtr) ** 2),
                        atol=1e-6, rtol=1e-5), mse_r

    pc = jnp.clip(predr, _CLIP_EPS, 1.0 - _CLIP_EPS)
    bce_ref = jnp.mean(-(gtr * jnp.log(pc) + (1.0 - gtr) * jnp.log(1.0 - pc)))
    bce = jax.block_until_ready(
        mask_loss(predr, gtr, loss_type="BCE", do_mean=True))
    assert jnp.allclose(bce, bce_ref, atol=1e-5, rtol=1e-5), (bce, bce_ref)

    print("KERNEL_OK")
</pallas_src>

<mosaic_0001>
module attributes {stable_mosaic.version = 11 : i64} {
  func.func @_mask_loss_mean_kernel(%arg0: i32, %arg1: i32, %arg2: memref<8x128xf32, #tpu.memory_space<vmem>>, %arg3: memref<8x128xf32, #tpu.memory_space<vmem>>, %arg4: memref<1x1x128xf32, #tpu.memory_space<vmem>>, %arg5: memref<1x128xf32, #tpu.memory_space<vmem>>) attributes {dimension_semantics = [#tpu.dimension_semantics<parallel>, #tpu.dimension_semantics<arbitrary>], iteration_bounds = array<i64: 1, 1>, scalar_prefetch = 0 : i64, scratch_operands = 1 : i64, tpu.core_type = #tpu.core_type<tc>, window_params = [{transform_indices = @transform_0, window_bounds = array<i64: 8, 128>}, {transform_indices = @transform_1, window_bounds = array<i64: 8, 128>}, {transform_indices = @transform_2, window_bounds = array<i64: 1, 1, 128>}]} {
    %c0_i32 = arith.constant 0 : i32
    %0 = arith.cmpi eq, %arg1, %c0_i32 : i32
    %1 = arith.extui %0 : i1 to i32
    %c0_i32_0 = arith.constant 0 : i32
    %2 = arith.cmpi ne, %1, %c0_i32_0 : i32
    scf.if %2 {
      %cst_10 = arith.constant 0.000000e+00 : f32
      %15 = vector.broadcast %cst_10 : f32 to vector<1x128xf32>
      %c0_11 = arith.constant 0 : index
      %c0_12 = arith.constant 0 : index
      %16 = vector.load %arg5[%c0_11, %c0_12] : memref<1x128xf32, #tpu.memory_space<vmem>>, vector<1x128xf32>
      tpu.vector_store %arg5[%c0_11, %c0_12], %15 {strides = array<i32>} : memref<1x128xf32, #tpu.memory_space<vmem>>, vector<1x128xf32>,
    } else {
    }
    %c0 = arith.constant 0 : index
    %c0_1 = arith.constant 0 : index
    %3 = vector.load %arg2[%c0, %c0_1] : memref<8x128xf32, #tpu.memory_space<vmem>>, vector<8x128xf32>
    %c0_2 = arith.constant 0 : index
    %c0_3 = arith.constant 0 : index
    %4 = vector.load %arg3[%c0_2, %c0_3] : memref<8x128xf32, #tpu.memory_space<vmem>>, vector<8x128xf32>
    %5 = arith.subf %3, %4 : vector<8x128xf32>
    %6 = arith.mulf %5, %5 : vector<8x128xf32>
    %c0_4 = arith.constant 0 : index
    %c0_5 = arith.constant 0 : index
    %7 = vector.load %arg5[%c0_4, %c0_5] : memref<1x128xf32, #tpu.memory_space<vmem>>, vector<1x128xf32>
    %cst = arith.constant dense<0.000000e+00> : vector<128xf32>
    %8 = vector.multi_reduction <add>, %6, %cst [0] : vector<8x128xf32> to vector<128xf32>
    %9 = vector.shape_cast %8 : vector<128xf32> to vector<1x128xf32>
    %10 = arith.addf %7, %9 : vector<1x128xf32>
    %c0_6 = arith.constant 0 : index
    %c0_7 = arith.constant 0 : index
    %11 = vector.load %arg5[%c0_6, %c0_7] : memref<1x128xf32, #tpu.memory_space<vmem>>, vector<1x128xf32>
    tpu.vector_store %arg5[%c0_6, %c0_7], %10 {strides = array<i32>} : memref<1x128xf32, #tpu.memory_space<vmem>>, vector<1x128xf32>,
    %c0_i32_8 = arith.constant 0 : i32
    %12 = arith.cmpi eq, %arg1, %c0_i32_8 : i32
    %13 = arith.extui %12 : i1 to i32
    %c0_i32_9 = arith.constant 0 : i32
    %14 = arith.cmpi ne, %13, %c0_i32_9 : i32
    scf.if %14 {
      %c0_10 = arith.constant 0 : index
      %c0_11 = arith.constant 0 : index
      %15 = vector.load %arg5[%c0_10, %c0_11] : memref<1x128xf32, #tpu.memory_space<vmem>>, vector<1x128xf32>
      %c0_12 = arith.constant 0 : index
      %c0_13 = arith.constant 0 : index
      %c0_14 = arith.constant 0 : index
      %16 = vector.load %arg4[%c0_12, %c0_13, %c0_14] : memref<1x1x128xf32, #tpu.memory_space<vmem>>, vector<1x1x128xf32>
      %17 = vector.shape_cast %16 : vector<1x1x128xf32> to vector<1x128xf32>
      %18 = vector.shape_cast %15 : vector<1x128xf32> to vector<1x1x128xf32>
      tpu.vector_store %arg4[%c0_12, %c0_13, %c0_14], %18 {strides = array<i32>} : memref<1x1x128xf32, #tpu.memory_space<vmem>>, vector<1x1x128xf32>,
    } else {
    }
    return
  }
  func.func @transform_0(%arg0: i32, %arg1: i32) -> (i32, i32) {
    %c1_i32 = arith.constant 1 : i32
    %0 = arith.muli %arg0, %c1_i32 : i32
    %1 = arith.addi %0, %arg1 : i32
    %c0_i32 = arith.constant 0 : i32
    %c0_i32_0 = arith.constant 0 : i32
    return %1, %c0_i32 : i32, i32
  }
  func.func @transform_1(%arg0: i32, %arg1: i32) -> (i32, i32) {
    %c1_i32 = arith.constant 1 : i32
    %0 = arith.muli %arg0, %c1_i32 : i32
    %1 = arith.addi %0, %arg1 : i32
    %c0_i32 = arith.constant 0 : i32
    %c0_i32_0 = arith.constant 0 : i32
    return %1, %c0_i32 : i32, i32
  }
  func.func @transform_2(%arg0: i32, %arg1: i32) -> (i32, i32, i32) {
    %c0_i32 = arith.constant 0 : i32
    %c0_i32_0 = arith.constant 0 : i32
    %c0_i32_1 = arith.constant 0 : i32
    return %arg0, %c0_i32, %c0_i32_0 : i32, i32, i32
  }
}

</mosaic_0001>

<bundles_post_ra>
// kernel: tpu_custom_call.1
= control target key start
LH: loop header
LB: loop body
LE: loop exit
PB: predicated region body
PF: predicated region fallthrough
CT: control target
= control target key end

     0   :  { %7 = vsyncpa [#allocation4], 0  ;;  %s214_s0 = inlined_call_operand.hbm [shape: f32[8,128], index: 0, kind: input, shape index: {}]   ;;  %s215_s1 = inlined_call_operand.hbm [shape: f32[8,128], index: 1, kind: input, shape index: {}]   ;;  %s216_s2 = inlined_call_operand.hbm [shape: f32[1,1,128], index: 2, kind: output, shape index: {}]  }
   0x1   :  { %8 = vsyncpa [#allocation7], 0 }
   0x2   :  { %9 = vsyncpa [#allocation5], 0  ;;  %s159_s9 = smov [#allocation3]   ;;  %s160_s11 = smov [#allocation6]  }
   0x3   :  { %s19_s10 = sshll.u32 %s159_s9, 4  ;;  %s32_s12 = sshll.u32 %s160_s11, 4  ;;  %s20_s10 = int_to_ptr.vmem [resolvable:$true] %s19_s10  ;;  %s33_s12 = int_to_ptr.vmem [resolvable:$true] %s32_s12 }
   0x4   :  { %s87_s15 = scalar_lea.hbm %s214_s0, 128 }
   0x5   :  { %p88_p0 = scmp.ne.s32.totalorder %s214_s0, %s87_s15  ;;  %p91_p1 = scmp.lt.u32.totalorder %s87_s15, %s214_s0 }
   0x7   :  { %p93_p2 = pnand %p91_p1, %p88_p0 }
   0x9   :  { %96 = shalt.err (!%p93_p2)
}
   0xa   :  { %s97_s20 = scalar_lea.vmem %s20_s10, 128  ;;  %p102_p4 = scmp.lt.s32.totalorder %s20_s10, %s20_s10 }
   0xb   :  { %p98_p3 = scmp.ne.s32.totalorder %s20_s10, %s97_s20  ;;  %p103_p5 = scmp.lt.s32.totalorder %s97_s20, %s97_s20 }
   0xd   :  { %p104_p6 = por %p103_p5, %p102_p4 }
   0xf   :  { %p105_p7 = pnand %p104_p6, %p98_p3 }
  0x11   :  { %108 = shalt.err (!%p105_p7)
}
  0x12   :  { %22 = dma.hbm_to_vmem [thread:$0]  %s214_s0, 128, %s20_s10, [#allocation4]  }
  0x13   :  { %s109_s25 = scalar_lea.hbm %s215_s1, 128 }
  0x14   :  { %p110_p8 = scmp.ne.s32.totalorder %s215_s1, %s109_s25  ;;  %p113_p9 = scmp.lt.u32.totalorder %s109_s25, %s215_s1 }
  0x16   :  { %p115_p10 = pnand %p113_p9, %p110_p8 }
  0x18   :  { %118 = shalt.err (!%p115_p10)
}
  0x19   :  { %s119_s30 = scalar_lea.vmem %s33_s12, 128  ;;  %p124_p12 = scmp.lt.s32.totalorder %s33_s12, %s33_s12 }
  0x1a   :  { %p120_p11 = scmp.ne.s32.totalorder %s33_s12, %s119_s30  ;;  %p125_p13 = scmp.lt.s32.totalorder %s119_s30, %s119_s30 }
  0x1c   :  { %p126_p0 = por %p125_p13, %p124_p12 }
  0x1e   :  { %p127_p1 = pnand %p126_p0, %p120_p11 }
  0x20   :  { %130 = shalt.err (!%p127_p1)
}
  0x21   :  { %35 = dma.hbm_to_vmem [thread:$0]  %s215_s1, 128, %s33_s12, [#allocation7]  }
  0x22   :  { %153 = dma.done.wait [#allocation4], 128  }
  0x23   :  { %154 = vsyncadd [#allocation4], 4294967168 }
  0x24   :  { %155 = dma.done.wait [#allocation7], 128  }
  0x25   :  { %156 = vsyncadd [#allocation7], 4294967168  ;;  %v161_v0 = vmov 0.0   ;;  %v49_v1 = vld [vmem:[#allocation3] sm:$0xff]  ;;  %v50_v2 = vld [vmem:[#allocation6] sm:$0xff]  ;;  %s162_s1 = smov [#allocation8]  }
  0x26   :  { %48 = vst [vmem:[#allocation2] sm:$0x1] %v161_v0  ;;  %v51_v3 = vsub.f32 %v49_v1, %v50_v2  ;;  %s73_s4 = sshll.u32 %s162_s1, 4  ;;  %s74_s4 = int_to_ptr.vmem [resolvable:$true] %s73_s4 }
  0x27   :  { %s131_s5 = scalar_lea.vmem %s74_s4, 16  ;;  %s135_s6 = scalar_lea.vmem %s74_s4, 32 }
  0x28   :  { %v52_v4 = vmul.f32 %v51_v3, %v51_v3  ;;  %p132_p2 = scmp.ne.s32.totalorder %s74_s4, %s131_s5  ;;  %p136_p3 = scmp.lt.s32.totalorder %s74_s4, %s74_s4 }
  0x29   :  { %p137_p4 = scmp.lt.s32.totalorder %s135_s6, %s131_s5 }
  0x2a   :  { %v54_v5 = vrot.slane %v52_v4, 4 }
  0x2b   :  { %p138_p5 = por %p137_p4, %p136_p3 }
  0x2c   :  { %v55_v6 = vadd.f32 %v54_v5, %v52_v4 }
  0x2d   :  { %v53_v10 = vld [vmem:[#allocation2] sm:$0x1]  ;;  %p139_p6 = pnand %p138_p5, %p132_p2 }
  0x2e   :  { %v56_v7 = vrot.slane %v55_v6, 2 }
  0x30   :  { %v57_v8 = vadd.f32 %v56_v7, %v55_v6 }
  0x32   :  { %v58_v9 = vrot.slane %v57_v8, 1 }
  0x34   :  { %v59_v11 = vadd.f32 %v58_v9, %v57_v8 }
  0x36   :  { %v60_v12 = vadd.f32 %v59_v11, %v53_v10 }
  0x38   :  { %61 = vst [vmem:[#allocation2] sm:$0x1] %v60_v12 }
  0x3f   :  { %v65_v13 = vld [vmem:[#allocation2] sm:$0x1] }
  0x40   :  { %66 = vst [vmem:[#allocation8] sm:$0x1] %v65_v13 }
  0x41   :  { %142 = shalt.err (!%p139_p6)
}
  0x42   :  { %s143_s9 = scalar_lea.hbm %s216_s2, 16 }
  0x43   :  { %p144_p7 = scmp.ne.s32.totalorder %s216_s2, %s143_s9  ;;  %p147_p8 = scmp.lt.u32.totalorder %s143_s9, %s216_s2 }
  0x45   :  { %p149_p9 = pnand %p147_p8, %p144_p7 }
  0x47   :  { %152 = shalt.err (!%p149_p9)
}
  0x48   :  { %76 = dma.vmem_to_hbm [thread:$0]  %s74_s4, 16, %s216_s2, [#allocation5]  }
  0x49   :  { %157 = dma.done.wait [#allocation5], 16  }
  0x4a   :  { %158 = vsyncadd [#allocation5], 4294967280 }
  0x4b   :  { %80 = vsyncpa [#allocation4], 1 }
  0x4c   :  { %81 = vsyncpa [#allocation7], 1 }
  0x4d   :  { %82 = vsyncpa [#allocation5], 1 }

</bundles_post_ra>
